<compile_context>
chip_gen: v7x
topology: tpu7x:2x2x1
jax: 0.10.0
libtpu: 0.0.40
codegen_flags: <defaults>
</compile_context>

<pallas_src>
from functools import partial

import jax
import jax.numpy as jnp
from jax.experimental import pallas as pl
from jax.experimental.pallas import tpu as pltpu

# ---------------- SigLIP-like toy config (production: H=1152, nh=16, S=729) --
BATCH = 2
SEQ = 8
HIDDEN = 128
NUM_HEADS = 4
HEAD_DIM = HIDDEN // NUM_HEADS


def _siglip_attention_kernel(x_ref, wqkv_ref, bqkv_ref, wo_ref, bo_ref,
                             out_ref, acc_ref, *, heads_per_group, head_dim):
    """One (batch-tile, head-group) grid step."""
    g = pl.program_id(1)                      # head-group (reduction) axis
    tb, s, h = x_ref.shape
    gh, hd = heads_per_group, head_dim
    gw = gh * hd                              # width of this head group
    rows = tb * s

    @pl.when(g == 0)
    def _init():
        acc_ref[...] = jnp.zeros_like(acc_ref)

    # ---- group QKV projection: bf16 operands, f32 accumulation -------------
    # The attention scale is already folded into the q columns of wqkv/bqkv.
    x = x_ref[...].reshape(rows, h)                               # bf16
    qkv = jnp.dot(x, wqkv_ref[...],
                  preferred_element_type=jnp.float32) + bqkv_ref[0]  # (rows, 3gw)

    q = qkv[:, 0 * gw:1 * gw]
    k = qkv[:, 1 * gw:2 * gw]
    v = qkv[:, 2 * gw:3 * gw]

    def heads_leading(t):                     # (rows, gw) -> (tb*gh, s, hd)
        t = t.reshape(tb, s, gh, hd)
        return jnp.swapaxes(t, 1, 2).reshape(tb * gh, s, hd)

    qh = heads_leading(q).astype(jnp.bfloat16)
    kh = heads_leading(k).astype(jnp.bfloat16)
    vh = heads_leading(v).astype(jnp.bfloat16)

    # ---- head-batched attention for this group (softmax in f32) ------------
    scores = jnp.einsum("bqd,bkd->bqk", qh, kh,
                        preferred_element_type=jnp.float32)       # (tb*gh, s, s)
    m = jnp.max(scores, axis=-1, keepdims=True)
    p = jnp.exp(scores - m)
    denom = jnp.sum(p, axis=-1, keepdims=True)
    # approx reciprocal goes to the EUP; ~2^-12 rel error, fine at our tol.
    probs = (p * pl.reciprocal(denom, approx=True)).astype(jnp.bfloat16)
    ctx = jnp.einsum("bqk,bkd->bqd", probs, vh,
                     preferred_element_type=jnp.float32)          # (tb*gh, s, hd)

    # back to (rows, gw): rows are (batch, seq); columns are (local head, d)
    ctx = jnp.swapaxes(ctx.reshape(tb, gh, s, hd), 1, 2)
    ctx = ctx.reshape(rows, gw).astype(jnp.bfloat16)

    # ---- partial out-projection for this head group, accumulated in f32 ----
    acc_ref[...] += jnp.dot(ctx, wo_ref[...], preferred_element_type=jnp.float32)

    @pl.when(g == pl.num_programs(1) - 1)
    def _finalize():
        out = acc_ref[...] + bo_ref[0]
        out_ref[...] = out.reshape(tb, s, h).astype(out_ref.dtype)


def _gemm_row_target():
    """GEMM M-dim fill target: 256 on v6e/v7x (2x256x256 MXU), 128 on v5e."""
    try:
        info = pltpu.get_tpu_info()
        name = str(getattr(info, "chip_version", "")).lower()
        if "v5" in name or "5e" in name or "5p" in name:
            return 128
    except Exception:
        pass
    return 256


def _pick_batch_tile(batch, seq, row_target):
    tb = min(batch, max(1, pl.cdiv(row_target, seq)))
    if batch >= 2:
        tb = min(tb, batch // 2)   # keep >= 2 parallel grid steps (v7x: 2 TCs)
    tb = max(tb, 1)
    while batch % tb:
        tb -= 1
    return tb


def prepare_siglip_params(params, *, num_heads, head_group=None):
    """One-time parameter transform (NOT called per forward pass):
      * fold the attention scale into the q columns of wqkv / bqkv,
      * regroup qkv columns / out-proj rows by head group so the kernel can
        tile attention over a head-group grid axis with plain BlockSpecs,
      * cast matmul weights to bf16 (MXU-native; halves weight DMA)."""
    wqkv = params["wqkv"].astype(jnp.float32)   # (H, 3H): [Q | K | V] columns
    bqkv = params["bqkv"].astype(jnp.float32)   # (3H,)
    wo = params["wo"].astype(jnp.float32)       # (H, H)
    bo = params["bo"].astype(jnp.float32)       # (H,)
    H = wqkv.shape[0]
    head_dim = H // num_heads
    scale = head_dim ** -0.5

    if head_group is None:
        # largest divisor of num_heads keeping the out-proj K-dim <= 256
        head_group = 1
        for cand in range(1, num_heads + 1):
            if num_heads % cand == 0 and cand * head_dim <= 256:
                head_group = cand
    assert num_heads % head_group == 0
    n_groups = num_heads // head_group
    gw = head_group * head_dim

    # fold the softmax scale into q (removes a (rows, H) VPU pass per step)
    wqkv = wqkv.at[:, :H].multiply(scale)
    bqkv = bqkv.at[:H].multiply(scale)

    q_w, k_w, v_w = jnp.split(wqkv, 3, axis=1)

    def grp_cols(t):                            # (H, H) -> (n_groups, H, gw)
        return jnp.swapaxes(t.reshape(H, n_groups, gw), 0, 1)

    wqkv_g = jnp.concatenate(
        [grp_cols(q_w), grp_cols(k_w), grp_cols(v_w)], axis=-1)  # (G, H, 3gw)

    q_b, k_b, v_b = jnp.split(bqkv, 3)
    bqkv_g = jnp.concatenate(
        [q_b.reshape(n_groups, gw), k_b.reshape(n_groups, gw),
         v_b.reshape(n_groups, gw)], axis=-1).reshape(n_groups, 1, 3 * gw)

    wo_g = wo.reshape(n_groups, gw, H)          # out-proj rows grouped by head

    return {
        "wqkv_g": wqkv_g.astype(jnp.bfloat16),
        "bqkv_g": bqkv_g,                       # f32
        "wo_g": wo_g.astype(jnp.bfloat16),
        "bo": bo.reshape(1, H),                 # f32
        "num_heads": num_heads,
        "head_group": head_group,
    }


def siglip_attention(hidden_states, prepared, *, batch_tile=None):
    """Pallas SiglipAttention.forward: (B, S, H) -> (B, S, H) (bf16 in/out)."""
    B, S, H = hidden_states.shape
    num_heads = prepared["num_heads"]
    head_group = prepared["head_group"]
    head_dim = H // num_heads
    n_groups = num_heads // head_group
    gw = head_group * head_dim

    if batch_tile is None:
        batch_tile = _pick_batch_tile(B, S, _gemm_row_target())
    TB = batch_tile
    assert B % TB == 0
    grid = (B // TB, n_groups)        # reduction (head-group) axis innermost

    act_bytes = jnp.dtype(hidden_states.dtype).itemsize

    in_specs = [
        # hidden_states tile: constant across g -> fetched once per batch tile
        pl.BlockSpec((TB, S, H), lambda b, g: (b, 0, 0)),
        # per-head-group weight/bias slabs: change with g, so the default
        # double-buffering pipelines their DMA under the previous group's MXU
        # work (the review's Buffered(1) suggestion applied to grid-constant
        # weights; after this restructuring only the tiny bo stays constant).
        pl.BlockSpec((None, H, 3 * gw), lambda b, g: (g, 0, 0)),
        pl.BlockSpec((None, 1, 3 * gw), lambda b, g: (g, 0, 0)),
        pl.BlockSpec((None, gw, H), lambda b, g: (g, 0, 0)),
        pl.BlockSpec((1, H), lambda b, g: (0, 0)),
    ]
    out_specs = pl.BlockSpec((TB, S, H), lambda b, g: (b, 0, 0))

    # ---- explicit scoped-VMEM limit from the actual working-set budget ----
    rows = TB * S
    budget = (
        2 * rows * H * act_bytes                                   # x (dbl buf)
        + 2 * rows * H * act_bytes                                 # out (dbl buf)
        + 2 * (H * 3 * gw * 2 + 3 * gw * 4 + gw * H * 2 + H * 4)   # weight tiles
        + rows * H * 4                                             # f32 acc scratch
        + rows * 3 * gw * 4                                        # qkv f32
        + 3 * rows * gw * 2                                        # q/k/v bf16
        + TB * head_group * S * S * 6                              # scores+probs
        + rows * gw * 4                                            # ctx f32
    )
    vmem_limit = max(32 << 20, int(budget * 1.5))
    try:
        phys = int(pltpu.get_tpu_info().vmem_capacity_bytes)
    except Exception:
        phys = 64 << 20                       # v7x physical per-core VMEM
    vmem_limit = min(vmem_limit, max(32 << 20, phys - (8 << 20)))

    flops = (2 * B * S * H * 3 * H                         # qkv projection
             + 2 * 2 * B * num_heads * S * S * head_dim    # q@k^T and p@v
             + 2 * B * S * H * H)                          # out projection
    # HBM traffic: activations both ways + weights re-fetched once per batch
    # tile (head-group axis is innermost); scores/probs never leave VMEM.
    weight_bytes = (prepared["wqkv_g"].size * 2 + prepared["wo_g"].size * 2
                    + prepared["bqkv_g"].size * 4 + prepared["bo"].size * 4)
    bytes_accessed = 2 * B * S * H * act_bytes + (B // TB) * weight_bytes
    cost = pl.CostEstimate(flops=int(flops),
                           transcendentals=int(B * num_heads * S * S),
                           bytes_accessed=int(bytes_accessed))

    return pl.pallas_call(
        partial(_siglip_attention_kernel,
                heads_per_group=head_group, head_dim=head_dim),
        out_shape=jax.ShapeDtypeStruct((B, S, H), hidden_states.dtype),
        grid_spec=pltpu.PrefetchScalarGridSpec(
            num_scalar_prefetch=0,
            grid=grid,
            in_specs=in_specs,
            out_specs=out_specs,
            scratch_shapes=[pltpu.VMEM((TB * S, H), jnp.float32)],
        ),
        compiler_params=pltpu.CompilerParams(
            dimension_semantics=("parallel", "arbitrary"),
            vmem_limit_bytes=int(vmem_limit),
        ),
        cost_estimate=cost,
    )(hidden_states, prepared["wqkv_g"], prepared["bqkv_g"],
      prepared["wo_g"], prepared["bo"])


def make_params(key):
    """f32 parameters in the module-equivalent layout (W stored as
    [in_features, out_features] so x @ W == PyTorch x @ W.T)."""
    k0, k1, k2, k3 = jax.random.split(key, 4)
    s = 0.02
    return {
        "wqkv": jax.random.normal(k0, (HIDDEN, 3 * HIDDEN), jnp.float32) * s,
        "bqkv": jax.random.normal(k1, (3 * HIDDEN,), jnp.float32) * s,
        "wo": jax.random.normal(k2, (HIDDEN, HIDDEN), jnp.float32) * s,
        "bo": jax.random.normal(k3, (HIDDEN,), jnp.float32) * s,
    }


def reference(x, p):
    """Pure-JAX f32 reference of SiglipAttention.forward."""
    B, S, H = x.shape
    scale = HEAD_DIM ** -0.5
    qkv = x @ p["wqkv"] + p["bqkv"]
    q, k, v = jnp.split(qkv, 3, axis=-1)

    def heads(t):
        return t.reshape(B, S, NUM_HEADS, HEAD_DIM)

    scores = jnp.einsum("bqhd,bkhd->bhqk", heads(q), heads(k)) * scale
    probs = jax.nn.softmax(scores, axis=-1)
    ctx = jnp.einsum("bhqk,bkhd->bqhd", probs, heads(v)).reshape(B, S, H)
    return ctx @ p["wo"] + p["bo"]


if __name__ == "__main__":
    key = jax.random.PRNGKey(0)
    kx, kp = jax.random.split(key)
    x_f32 = jax.random.normal(kx, (BATCH, SEQ, HIDDEN), jnp.float32)
    params = make_params(kp)

    # One-time parameter transform (scale fold + head-group relayout + bf16).
    # head_group=2 -> 2 head-group grid steps at toy size, exercising the
    # accumulation (reduction-axis) path.
    prepared = prepare_siglip_params(params, num_heads=NUM_HEADS, head_group=2)

    # Activations travel bf16 across the kernel boundary; softmax/accum stay f32.
    x = x_f32.astype(jnp.bfloat16)

    out = siglip_attention(x, prepared)      # module also returns a None aux
    out = jax.block_until_ready(out)

    assert out.shape == (BATCH, SEQ, HIDDEN)
    ref = reference(x.astype(jnp.float32), params)
    out_f32 = out.astype(jnp.float32)
    max_err = float(jnp.max(jnp.abs(out_f32 - ref)))
    assert jnp.allclose(out_f32, ref, atol=2e-2, rtol=2e-2), max_err

    print("KERNEL_OK")
</pallas_src>

<mosaic_0001>
module attributes {stable_mosaic.version = 11 : i64} {
  func.func @_siglip_attention_kernel(%arg0: i32, %arg1: i32, %arg2: memref<1x8x128xbf16, #tpu.memory_space<vmem>>, %arg3: memref<1x128x192xbf16, #tpu.memory_space<vmem>>, %arg4: memref<1x1x192xf32, #tpu.memory_space<vmem>>, %arg5: memref<1x64x128xbf16, #tpu.memory_space<vmem>>, %arg6: memref<1x128xf32, #tpu.memory_space<vmem>>, %arg7: memref<1x8x128xbf16, #tpu.memory_space<vmem>>, %arg8: memref<8x128xf32, #tpu.memory_space<vmem>>) attributes {dimension_semantics = [#tpu.dimension_semantics<parallel>, #tpu.dimension_semantics<arbitrary>], iteration_bounds = array<i64: 2, 2>, scalar_prefetch = 0 : i64, scratch_operands = 1 : i64, tpu.core_type = #tpu.core_type<tc>, window_params = [{transform_indices = @transform_0, window_bounds = array<i64: 1, 8, 128>}, {transform_indices = @transform_1, window_bounds = array<i64: 1, 128, 192>}, {transform_indices = @transform_2, window_bounds = array<i64: 1, 1, 192>}, {transform_indices = @transform_3, window_bounds = array<i64: 1, 64, 128>}, {pipeline_mode = #tpu.pipeline_mode<synchronous>, transform_indices = @transform_4, window_bounds = array<i64: 1, 128>}, {transform_indices = @transform_5, window_bounds = array<i64: 1, 8, 128>}]} {
    %c0_i32 = arith.constant 0 : i32
    %0 = arith.cmpi eq, %arg1, %c0_i32 : i32
    %1 = arith.extui %0 : i1 to i32
    %c0_i32_0 = arith.constant 0 : i32
    %2 = arith.cmpi ne, %1, %c0_i32_0 : i32
    scf.if %2 {
      %cst_22 = arith.constant 0.000000e+00 : f32
      %54 = vector.broadcast %cst_22 : f32 to vector<8x128xf32>
      %c0_23 = arith.constant 0 : index
      %c0_24 = arith.constant 0 : index
      %55 = vector.load %arg8[%c0_23, %c0_24] : memref<8x128xf32, #tpu.memory_space<vmem>>, vector<8x128xf32>
      tpu.vector_store %arg8[%c0_23, %c0_24], %54 {strides = array<i32>} : memref<8x128xf32, #tpu.memory_space<vmem>>, vector<8x128xf32>,
    } else {
    }
    %c0 = arith.constant 0 : index
    %c0_1 = arith.constant 0 : index
    %c0_2 = arith.constant 0 : index
    %3 = vector.load %arg2[%c0, %c0_1, %c0_2] : memref<1x8x128xbf16, #tpu.memory_space<vmem>>, vector<1x8x128xbf16>
    %4 = vector.shape_cast %3 : vector<1x8x128xbf16> to vector<8x128xbf16>
    %c0_3 = arith.constant 0 : index
    %c0_4 = arith.constant 0 : index
    %c0_5 = arith.constant 0 : index
    %5 = vector.load %arg3[%c0_3, %c0_4, %c0_5] : memref<1x128x192xbf16, #tpu.memory_space<vmem>>, vector<1x128x192xbf16>
    %6 = vector.shape_cast %5 : vector<1x128x192xbf16> to vector<128x192xbf16>
    %cst = arith.constant dense<0.000000e+00> : vector<8x192xf32>
    %7 = tpu.matmul %4, %6, %cst {dimension_numbers = #tpu.dot_dimension_numbers<[1], [0], [0], [1], [0, 0, 1, 1], [], []>} : vector<8x128xbf16>, vector<128x192xbf16>, vector<8x192xf32> -> vector<8x192xf32>
    %c0_6 = arith.constant 0 : index
    %c0_7 = arith.constant 0 : index
    %c0_8 = arith.constant 0 : index
    %8 = vector.load %arg4[%c0_6, %c0_7, %c0_8] : memref<1x1x192xf32, #tpu.memory_space<vmem>>, vector<1x1x192xf32>
    %9 = vector.shape_cast %8 : vector<1x1x192xf32> to vector<192xf32>
    %10 = vector.shape_cast %9 : vector<192xf32> to vector<1x192xf32>
    %11 = vector.broadcast %10 : vector<1x192xf32> to vector<8x192xf32>
    %12 = arith.addf %7, %11 : vector<8x192xf32>
    %13 = vector.extract_strided_slice %12 {offsets = [0, 0], sizes = [8, 64], strides = [1, 1]} : vector<8x192xf32> to vector<8x64xf32>
    %14 = vector.extract_strided_slice %12 {offsets = [0, 64], sizes = [8, 64], strides = [1, 1]} : vector<8x192xf32> to vector<8x64xf32>
    %15 = vector.extract_strided_slice %12 {offsets = [0, 128], sizes = [8, 64], strides = [1, 1]} : vector<8x192xf32> to vector<8x64xf32>
    %16 = vector.shape_cast %13 : vector<8x64xf32> to vector<1x8x2x32xf32>
    %17 = tpu.transpose %16, [0, 2, 1, 3] : vector<1x8x2x32xf32> -> vector<1x2x8x32xf32>
    %18 = vector.shape_cast %17 : vector<1x2x8x32xf32> to vector<2x8x32xf32>
    %19 = arith.truncf %18 : vector<2x8x32xf32> to vector<2x8x32xbf16>
    %20 = vector.shape_cast %14 : vector<8x64xf32> to vector<1x8x2x32xf32>
    %21 = tpu.transpose %20, [0, 2, 1, 3] : vector<1x8x2x32xf32> -> vector<1x2x8x32xf32>
    %22 = vector.shape_cast %21 : vector<1x2x8x32xf32> to vector<2x8x32xf32>
    %23 = arith.truncf %22 : vector<2x8x32xf32> to vector<2x8x32xbf16>
    %24 = vector.shape_cast %15 : vector<8x64xf32> to vector<1x8x2x32xf32>
    %25 = tpu.transpose %24, [0, 2, 1, 3] : vector<1x8x2x32xf32> -> vector<1x2x8x32xf32>
    %26 = vector.shape_cast %25 : vector<1x2x8x32xf32> to vector<2x8x32xf32>
    %27 = arith.truncf %26 : vector<2x8x32xf32> to vector<2x8x32xbf16>
    "tpu.trace_start"() <{level = 10 : i32, message = "bqd,bkd->bqk"}> : () -> ()
    %cst_9 = arith.constant dense<0.000000e+00> : vector<2x8x8xf32>
    %28 = tpu.matmul %19, %23, %cst_9 {dimension_numbers = #tpu.dot_dimension_numbers<[2], [2], [1], [1], [0, 0, 0, 1, 1, 1], [0], [0]>} : vector<2x8x32xbf16>, vector<2x8x32xbf16>, vector<2x8x8xf32> -> vector<2x8x8xf32>
    "tpu.trace_stop"() : () -> ()
    %cst_10 = arith.constant dense<0xFF800000> : vector<2x8xf32>
    %29 = vector.multi_reduction <maximumf>, %28, %cst_10 [2] : vector<2x8x8xf32> to vector<2x8xf32>
    %30 = vector.shape_cast %29 : vector<2x8xf32> to vector<2x8x1xf32>
    %31 = vector.broadcast %30 : vector<2x8x1xf32> to vector<2x8x8xf32>
    %32 = arith.subf %28, %31 : vector<2x8x8xf32>
    %33 = math.exp %32 : vector<2x8x8xf32>
    %cst_11 = arith.constant dense<0.000000e+00> : vector<2x8xf32>
    %34 = vector.multi_reduction <add>, %33, %cst_11 [2] : vector<2x8x8xf32> to vector<2x8xf32>
    %35 = vector.shape_cast %34 : vector<2x8xf32> to vector<2x8x1xf32>
    %36 = tpu.reciprocal %35 {approx = true} : vector<2x8x1xf32> -> vector<2x8x1xf32>
    %37 = vector.broadcast %36 : vector<2x8x1xf32> to vector<2x8x8xf32>
    %38 = arith.mulf %33, %37 : vector<2x8x8xf32>
    %39 = arith.truncf %38 : vector<2x8x8xf32> to vector<2x8x8xbf16>
    "tpu.trace_start"() <{level = 10 : i32, message = "bqk,bkd->bqd"}> : () -> ()
    %cst_12 = arith.constant dense<0.000000e+00> : vector<2x8x32xf32>
    %40 = tpu.matmul %39, %27, %cst_12 {dimension_numbers = #tpu.dot_dimension_numbers<[2], [1], [1], [2], [0, 0, 0, 1, 1, 2], [0], [0]>} : vector<2x8x8xbf16>, vector<2x8x32xbf16>, vector<2x8x32xf32> -> vector<2x8x32xf32>
    "tpu.trace_stop"() : () -> ()
    %41 = vector.shape_cast %40 : vector<2x8x32xf32> to vector<1x2x8x32xf32>
    %42 = tpu.transpose %41, [0, 2, 1, 3] : vector<1x2x8x32xf32> -> vector<1x8x2x32xf32>
    %43 = vector.shape_cast %42 : vector<1x8x2x32xf32> to vector<8x64xf32>
    %44 = arith.truncf %43 : vector<8x64xf32> to vector<8x64xbf16>
    %c0_13 = arith.constant 0 : index
    %c0_14 = arith.constant 0 : index
    %45 = vector.load %arg8[%c0_13, %c0_14] : memref<8x128xf32, #tpu.memory_space<vmem>>, vector<8x128xf32>
    %c0_15 = arith.constant 0 : index
    %c0_16 = arith.constant 0 : index
    %c0_17 = arith.constant 0 : index
    %46 = vector.load %arg5[%c0_15, %c0_16, %c0_17] : memref<1x64x128xbf16, #tpu.memory_space<vmem>>, vector<1x64x128xbf16>
    %47 = vector.shape_cast %46 : vector<1x64x128xbf16> to vector<64x128xbf16>
    %cst_18 = arith.constant dense<0.000000e+00> : vector<8x128xf32>
    %48 = tpu.matmul %44, %47, %cst_18 {dimension_numbers = #tpu.dot_dimension_numbers<[1], [0], [0], [1], [0, 0, 1, 1], [], []>} : vector<8x64xbf16>, vector<64x128xbf16>, vector<8x128xf32> -> vector<8x128xf32>
    %49 = arith.addf %45, %48 : vector<8x128xf32>
    %c0_19 = arith.constant 0 : index
    %c0_20 = arith.constant 0 : index
    %50 = vector.load %arg8[%c0_19, %c0_20] : memref<8x128xf32, #tpu.memory_space<vmem>>, vector<8x128xf32>
    tpu.vector_store %arg8[%c0_19, %c0_20], %49 {strides = array<i32>} : memref<8x128xf32, #tpu.memory_space<vmem>>, vector<8x128xf32>,
    %c1_i32 = arith.constant 1 : i32
    %51 = arith.cmpi eq, %arg1, %c1_i32 : i32
    %52 = arith.extui %51 : i1 to i32
    %c0_i32_21 = arith.constant 0 : i32
    %53 = arith.cmpi ne, %52, %c0_i32_21 : i32
    scf.if %53 {
      %c0_22 = arith.constant 0 : index
      %c0_23 = arith.constant 0 : index
      %54 = vector.load %arg8[%c0_22, %c0_23] : memref<8x128xf32, #tpu.memory_space<vmem>>, vector<8x128xf32>
      %c0_24 = arith.constant 0 : index
      %c0_25 = arith.constant 0 : index
      %55 = vector.load %arg6[%c0_24, %c0_25] : memref<1x128xf32, #tpu.memory_space<vmem>>, vector<1x128xf32>
      %56 = vector.shape_cast %55 : vector<1x128xf32> to vector<128xf32>
      %57 = vector.shape_cast %56 : vector<128xf32> to vector<1x128xf32>
      %58 = vector.broadcast %57 : vector<1x128xf32> to vector<8x128xf32>
      %59 = arith.addf %54, %58 : vector<8x128xf32>
      %60 = vector.shape_cast %59 : vector<8x128xf32> to vector<1x8x128xf32>
      %61 = arith.truncf %60 : vector<1x8x128xf32> to vector<1x8x128xbf16>
      %c0_26 = arith.constant 0 : index
      %c0_27 = arith.constant 0 : index
      %c0_28 = arith.constant 0 : index
      %62 = vector.load %arg7[%c0_26, %c0_27, %c0_28] : memref<1x8x128xbf16, #tpu.memory_space<vmem>>, vector<1x8x128xbf16>
      tpu.vector_store %arg7[%c0_26, %c0_27, %c0_28], %61 {strides = array<i32>} : memref<1x8x128xbf16, #tpu.memory_space<vmem>>, vector<1x8x128xbf16>,
    } else {
    }
    return
  }
  func.func @transform_0(%arg0: i32, %arg1: i32) -> (i32, i32, i32) {
    %c0_i32 = arith.constant 0 : i32
    %c0_i32_0 = arith.constant 0 : i32
    %c0_i32_1 = arith.constant 0 : i32
    return %arg0, %c0_i32, %c0_i32_0 : i32, i32, i32
  }
  func.func @transform_1(%arg0: i32, %arg1: i32) -> (i32, i32, i32) {
    %c0_i32 = arith.constant 0 : i32
    %c0_i32_0 = arith.constant 0 : i32
    %c0_i32_1 = arith.constant 0 : i32
    return %arg1, %c0_i32, %c0_i32_0 : i32, i32, i32
  }
  func.func @transform_2(%arg0: i32, %arg1: i32) -> (i32, i32, i32) {
    %c0_i32 = arith.constant 0 : i32
    %c0_i32_0 = arith.constant 0 : i32
    %c0_i32_1 = arith.constant 0 : i32
    return %arg1, %c0_i32, %c0_i32_0 : i32, i32, i32
  }
  func.func @transform_3(%arg0: i32, %arg1: i32) -> (i32, i32, i32) {
    %c0_i32 = arith.constant 0 : i32
    %c0_i32_0 = arith.constant 0 : i32
    %c0_i32_1 = arith.constant 0 : i32
    return %arg1, %c0_i32, %c0_i32_0 : i32, i32, i32
  }
  func.func @transform_4(%arg0: i32, %arg1: i32) -> (i32, i32) {
    %c0_i32 = arith.constant 0 : i32
    %c0_i32_0 = arith.constant 0 : i32
    %c0_i32_1 = arith.constant 0 : i32
    return %c0_i32, %c0_i32_0 : i32, i32
  }
  func.func @transform_5(%arg0: i32, %arg1: i32) -> (i32, i32, i32) {
    %c0_i32 = arith.constant 0 : i32
    %c0_i32_0 = arith.constant 0 : i32
    %c0_i32_1 = arith.constant 0 : i32
    return %arg0, %c0_i32, %c0_i32_0 : i32, i32, i32
  }
}

</mosaic_0001>

<bundles_post_ra>
// kernel: tpu_custom_call.1
= control target key start
LH: loop header
LB: loop body
LE: loop exit
PB: predicated region body
PF: predicated region fallthrough
CT: control target
= control target key end

     0   :  { %10 = vsyncpa [#allocation4], 0  ;;  %s2010_s0 = inlined_call_operand.vmem [shape: bf16[2,8,128], index: 0, kind: input, shape index: {}]   ;;  %s2011_s1 = inlined_call_operand.vmem [shape: bf16[2,128,192], index: 1, kind: input, shape index: {}]   ;;  %s2012_s2 = inlined_call_operand.vmem [shape: f32[2,1,192], index: 2, kind: input, shape index: {}]   ;;  %s2013_s3 = inlined_call_operand.vmem [shape: bf16[2,64,128], index: 3, kind: input, shape index: {}]   ;;  %s2014_s4 = inlined_call_operand.vmem [shape: f32[1,128], index: 4, kind: input, shape index: {}]   ;;  %s2015_s5 = inlined_call_operand.hbm [shape: bf16[2,8,128], index: 5, kind: output, shape index: {}]  }
   0x1   :  { %12 = vsyncpa [#allocation4 + $0x1], 0  ;;  %s1715_s18 = smov 0   ;;  %s1717_s19 = smov 0  }
   0x2   :  { %s1719_s20 = smov 0   ;;  %s1721_s21 = smov 0  }
   0x3   :  { %s1723_s22 = smov 0   ;;  %s1725_s23 = smov 0  }
   0x4   :  { %s1727_s24 = smov 0   ;;  %s1729_s25 = smov 0  }
   0x5 LB: > { %2021 = sst [smem:[#allocation6_spill]] %s1653_s20  ;;  %s1360_s26 = sadd.s32 4294967295, %s1673_s25   ;;  %s1673_s25 = sphi %s1729_s25, %s18_s25   ;;  %s1669_s24 = sphi %s1727_s24, %s2035_s24   ;;  %s1665_s23 = sphi %s1725_s23, %s2034_s23   ;;  %s1661_s22 = sphi %s1723_s22, %s2033_s22   ;;  %s1657_s21 = sphi %s1721_s21, %s2032_s21   ;;  %s1653_s20 = sphi %s1719_s20, %s2031_s20   ;;  %s1649_s19 = sphi %s1717_s19, %s2037_s19   ;;  %s1645_s18 = sphi %s1715_s18, %s2036_s18  }
   0x6   : > { %2022 = sst [smem:[#allocation7_spill]] %s1665_s23  ;;  %s1361_s27 = sadd.s32 4294967294, %s1673_s25  }
   0x7   : > { %2023 = sst [smem:[#allocation8_spill]] %s1669_s24  ;;  %s27_s28 = sadd.s32 1, %s1665_s23 }
   0x8   : > { %p28_p0 = scmp.ge.s32.totalorder %s27_s28, 2  ;;  %s30_s29 = sadd.s32 1, %s1669_s24 }
   0x9   : > { %p172_p1 = scmp.ne.s32.totalorder %s1653_s20, %s1649_s19  ;;  %p173_p2 = scmp.eq.s32.totalorder %s1360_s26, 3 }
   0xa   : > { %s2039_s28 = smov (%p28_p0, %s27_s28), 0  ;;  %s2041_s29 = smov (!%p28_p0, %s30_s29), %s1669_s24 }
   0xb   : > { %2024 = sst [smem:[#allocation9_spill]] %s2039_s28  ;;  %p1764_p3 = por %p173_p2, %p172_p1 }
   0xc   : > { %p178_p4 = scmp.ne.s32.totalorder %s1649_s19, %s1645_s18  ;;  %p32_p5 = scmp.ge.s32.totalorder %s2041_s29, 2 }
   0xd   : > { %p179_p6 = scmp.eq.s32.totalorder %s1361_s27, 3  ;;  %p1364_p7 = scmp.ge.s32.totalorder %s1673_s25, 1 }
   0xe   : > { %p230_p8 = scmp.lt.s32.totalorder %s1673_s25, 5  ;;  %s2043_s29 = smov (%p32_p5, %s2041_s29), 0 }
   0xf   : > { %2026 = sst [smem:[#allocation10_spill]] %s2043_s29  ;;  %p1774_p9 = por %p179_p6, %p178_p4 }
  0x10   : > { %p231_p10 = pnand %p1364_p7, %p230_p8  ;;  %s159_s7 = ssub.s32 %s1669_s24, %s2043_s29 }
  0x11   : > { %s162_s8 = sadd.s32 1, %s1653_s20  ;;  %p160_p11 = scmp.eq.s32.totalorder %s159_s7, 0 }
  0x12   : > { %234 = sbr.rel (%p231_p10) target bundleno = 1676 (0x68c), region = 40  ;;  %s2017_s10 = sand.u32 (!%p231_p10), 1, %s1649_s19  }
  0x13   : > { %s1782_s9 = scalar_select %p160_p11, %s1653_s20, %s162_s8  }
  0x14   : > { %p271_p12 = scmp.lt.s32.totalorder (!%p231_p10), %s1661_s22, 1  ;;  %s1788_s11 = sshll.u32 (!%p231_p10), %s2017_s10, 2 }
  0x15   : > { %2028 = sst [smem:[#allocation11_spill]] %s1782_s9  ;;  %p275_p13 = scmp.lt.s32.totalorder (!%p231_p10), %s1657_s21, 1 }
  0x16   : > { %p1372_p0 = scmp.ne.s32.totalorder (!%p231_p10), %s1657_s21, 0 }
  0x19   : > { %s272_s12 = scalar_select %p271_p12, %s1661_s22, 1 }
  0x1a   : > { %s276_s13 = scalar_select %p275_p13, %s1657_s21, 1 }
  0x1b   : > { %s1366_s14 = sshll.u32 %s272_s12, 2  ;;  %293 = sbr.rel (%p1372_p0) target bundleno = 34 (0x22), region = 44  ;;  %v1675_v0 = vmov (!%p1372_p0), 0.0  }
  0x1c   : > { %s1796_s17 = scalar_lea.vmem %s2010_s0, %s1366_s14  ;;  %s1412_s26 = sshll.u32 %s276_s13, 7  ;;  %294 = vst [vmem:[#allocation2] sm:$0xff] (!%p1372_p0), %v1675_v0 }
  0x1d   : > { %s1801_s8 = scalar_lea.vmem %s2011_s1, %s1412_s26  ;;  %s1369_s29 = sshll.u32 %s276_s13, 1 }
  0x1e   : > { %s1806_s24 = scalar_lea.vmem %s2012_s2, %s1369_s29  ;;  %s1413_s23 = sshll.u32 %s276_s13, 5 }
  0x1f   : > { %s1811_s20 = scalar_lea.vmem %s2013_s3, %s1413_s23  ;;  %s270_s14 = scalar_lea.vmem [#allocation3], %s1788_s11 }
  0x22 PF: > { %v1543_v1 = vld [vmem:[%s1801_s8 + $0x4] ss:$8 sps:$4 sm:$0xff]   ;;  %v1545_v2 = vld [vmem:[%s1801_s8] ss:$8 sps:$4 sm:$0xff]   ;;  %v1676_v3 = vmov 0   ;;  %v1677_v19 = vmov 0.0   ;;  %v314_v20 = vlaneseq }
  0x23   : > { %436 = vmatprep.mubr.bf16.mxu0 %v1676_v3  ;;  %404 = vmatprep.subr.bf16.mxu0 %v1543_v1  ;;  %v1546_v4 = vld [vmem:[%s1801_s8 + $0x14] ss:$8 sps:$4 sm:$0xff]   ;;  %v1548_v5 = vld [vmem:[%s1801_s8 + $0x10] ss:$8 sps:$4 sm:$0xff]   ;;  %v1549_v6 = vld [vmem:[%s1801_s8 + $0x24] ss:$8 sps:$4 sm:$0xff]  }
  0x24   : > { %405 = vmatpush1.bf16.msra.mxu0 %v1545_v2  ;;  %v1551_v7 = vld [vmem:[%s1801_s8 + $0x20] ss:$8 sps:$4 sm:$0xff]   ;;  %v1552_v8 = vld [vmem:[%s1801_s8 + $0x34] ss:$8 sps:$4 sm:$0xff]   ;;  %v1554_v9 = vld [vmem:[%s1801_s8 + $0x30] ss:$8 sps:$4 sm:$0xff]   ;;  %1427 = vmatprep.subr.bf16.mxu1 %v1677_v19 }
  0x25   : > { %406 = vmatprep.subr.bf16.mxu0 %v1546_v4  ;;  %v1555_v10 = vld [vmem:[%s1801_s8 + $0x44] ss:$8 sps:$4 sm:$0xff]   ;;  %v1557_v11 = vld [vmem:[%s1801_s8 + $0x40] ss:$8 sps:$4 sm:$0xff]   ;;  %v1558_v12 = vld [vmem:[%s1801_s8 + $0x54] ss:$8 sps:$4 sm:$0xff]  }
  0x26   : > { %v1560_v13 = vld [vmem:[%s1801_s8 + $0x50] ss:$8 sps:$4 sm:$0xff]   ;;  %v1561_v14 = vld [vmem:[%s1801_s8 + $0x64] ss:$8 sps:$4 sm:$0xff]   ;;  %v1563_v15 = vld [vmem:[%s1801_s8 + $0x60] ss:$8 sps:$4 sm:$0xff]  }
  0x27   : > { %v1564_v16 = vld [vmem:[%s1801_s8 + $0x74] ss:$8 sps:$4 sm:$0xff]   ;;  %v1566_v17 = vld [vmem:[%s1801_s8 + $0x70] ss:$8 sps:$4 sm:$0xff]   ;;  %v295_v18 = vld [vmem:[%s1796_s17] sm:$0xf] }
  0x28   : > { %407 = vmatpush1.bf16.msra.mxu0 %v1548_v5  ;;  %v1834_v21 = vshrl.u32 %v314_v20, 7  ;;  %v1838_v23 = vld [vmem:[%s1806_s24] sm:$0x3]  ;;  %s1678_s23 = smov 96   ;;  %s1679_s28 = smov 64   ;;  %vm1682_vm0 = vmmov 0  }
  0x29   : > { %408 = vmatprep.subr.bf16.mxu0 %v1549_v6  ;;  %v1680_v30 = vmov 1983009808   ;;  %v1681_v33 = vmov 1934713408   ;;  %1429 = vmatprep.mubr.msk.bf16.mxu1 %vm1682_vm0, %v1677_v19  ;;  %vm813_vm1 = vcmask 261120   ;;  %vm906_vm2 = vcmask 64512  }
  0x2a   : > { %v316_v22 = vsub.s32 0, %v1834_v21  ;;  %v451_v31 = vunpack.c.l.s4 %v1680_v30  ;;  %v482_v34 = vunpack.c.l.s4 %v1681_v33  ;;  %vm934_vm3 = vcmask 1043456   ;;  %p1406_p1 = scmp.ne.s32.totalorder %s1657_s21, 1 }
  0x2b   : > { %vm1179_vm4 = vcmask 523264  }
  0x2c   : > { %409 = vmatpush1.bf16.msra.mxu0 %v1551_v7  ;;  %v317_v24 = vrot.slane %v1838_v23, %v316_v22  ;;  %v452_v32 = vunpack.c.0.s8 %v451_v31  ;;  %v483_v36 = vunpack.c.0.s8 %v482_v34 }
  0x2d   : > { %410 = vmatprep.subr.bf16.mxu0 %v1552_v8 }
  0x2e   : > { %v1845_v35 = vsub.s32 %v452_v32, %v1834_v21  ;;  %v1849_v39 = vsub.s32 %v483_v36, %v1834_v21 }
  0x30   : > { %411 = vmatpush1.bf16.msra.mxu0 %v1554_v9 }
  0x31   : > { %412 = vmatprep.subr.bf16.mxu0 %v1555_v10 }
  0x34   : > { %413 = vmatpush1.bf16.msra.mxu0 %v1557_v11 }
  0x35   : > { %414 = vmatprep.subr.bf16.mxu0 %v1558_v12 }
  0x38   : > { %415 = vmatpush1.bf16.msra.mxu0 %v1560_v13 }
  0x39   : > { %416 = vmatprep.subr.bf16.mxu0 %v1561_v14 }
  0x3c   : > { %417 = vmatpush1.bf16.msra.mxu0 %v1563_v15 }
  0x3d   : > { %418 = vmatprep.subr.bf16.mxu0 %v1564_v16 }
  0x40   : > { %419 = vmatpush1.bf16.msra.mxu0 %v1566_v17 }
  0x41   : > { %1451 = vmatprep.subr.bf16.mxu0 %v1677_v19 }
  0x43   : > { %437 = vmatmul.mubr.bf16.vlgmr.msra.gmra.mrb[0].mxu0 %v295_v18 }
  0x44   : > { %1459 = vmatprep.mubr.msk.bf16.mxu0 %vm1682_vm0, %v1677_v19 }
 0x116   : > { %v438_v25 = vpop.f32.mrb[0].mxu0 }
 0x117   : > { %v439_v26 = vadd.f32 %v438_v25, %v317_v24  ;;  %v1841_v27 = vpop.f32.mrb[1].mxu0 }
 0x118   : > { %v442_v28 = vpop.f32.mrb[2].mxu0 }
 0x119   : > { %v443_v29 = vpop.f32.mrb[3].mxu0  ;;  %446 = vrot.lane.b32.xlu0 %v439_v26, %s1678_s23  ;;  %v449_v37 = vcombine.high %v439_v26, %v1677_v19  ;;  %v456_v40 = vrot.slane %v439_v26, %v1845_v35 }
 0x11b   : > { %v463_v43 = vrot.slane %v449_v37, %v1845_v35 }
 0x11d   : > { %567 = vrot.lane.b32.xlu0 %v439_v26, %s1679_s28 }
 0x18b   : > { %v447_v38 = vpop.permute.xlu0 %446 }
 0x18c   : > { %v464_v41 = vcombine.high %v447_v38, %v1677_v19  ;;  %v471_v42 = vrot.slane %v447_v38, %v1845_v35  ;;  %569 = vrot.lane.b32.xlu1 %v447_v38, %s1679_s28 }
 0x18e   : > { %v478_v44 = vrot.slane %v464_v41, %v1845_v35  ;;  %v479_v45 = vcombine.low %v456_v40, %v471_v42  ;;  %v480_v46 = vcombine.high %v456_v40, %v471_v42 }
 0x18f   : > { %v568_v3 = vpop.permute.xlu0 %567 }
 0x190   : > { %v487_v47 = vrot.slane %v479_v45, %v1849_v39  ;;  %v494_v48 = vrot.slane %v480_v46, %v1849_v39  ;;  %v495_v49 = vcombine.low %v463_v43, %v478_v44  ;;  %v496_v50 = vcombine.high %v463_v43, %v478_v44 }
 0x191   : > { %v573_v4 = vcombine.high %v568_v3, %v1677_v19  ;;  %v580_v6 = vrot.slane %v568_v3, %v1845_v35 }
 0x192   : > { %v503_v51 = vrot.slane %v495_v49, %v1849_v39  ;;  %v510_v52 = vrot.slane %v496_v50, %v1849_v39  ;;  %v515_v53 = vcombine.low %v487_v47, %v494_v48  ;;  %v1389_v54 = vcombine.high %v487_v47, %v494_v48 }
 0x193   : > { %v587_v9 = vrot.slane %v573_v4, %v1845_v35 }
 0x194   : > { %v522_v55 = vrot.slane %v515_v53, %v1845_v35  ;;  %v530_v56 = vrot.slane %v1389_v54, %v1845_v35  ;;  %v531_v57 = vcombine.low %v503_v51, %v510_v52  ;;  %v1390_v58 = vcombine.high %v503_v51, %v510_v52 }
 0x195   : > { %v320_v51 = vsub.s32 1, %v1834_v21 }
 0x196   : > { %v538_v59 = vrot.slane %v531_v57, %v1845_v35  ;;  %v546_v60 = vrot.slane %v1390_v58, %v1845_v35  ;;  %v547_v61 = vcombine.low %v522_v55, %v530_v56 }
 0x197   : > { %v321_v56 = vrot.slane %v1838_v23, %v320_v51 }
 0x198   : > { %v555_v62 = vcombine.low %v538_v59, %v546_v60  ;;  %v554_v63 = vrot.slane %v547_v61, %v1849_v39 }
 0x199   : > { %v441_v57 = vadd.f32 %v1841_v27, %v321_v56 }
 0x19a   : > { %v562_v0 = vrot.slane %v555_v62, %v1849_v39 }
 0x19b   : > { %v695_v60 = vcombine.high %v441_v57, %v1677_v19  ;;  %v702_v21 = vrot.slane %v441_v57, %v1845_v35 }
 0x19c   : > { %v563_v1 = vcombine.low %v554_v63, %v562_v0  ;;  %v564_v2 = vcombine.high %v554_v63, %v562_v0 }
 0x19e   : > { %v565_v42 = vpack.c.bf16 %v563_v1, %v563_v1  ;;  %v566_v44 = vpack.c.bf16 %v564_v2, %v564_v2  ;;  %v709_v1 = vrot.slane %v695_v60, %v1845_v35 }
 0x1fe   : > { %v570_v5 = vpop.permute.xlu1 %569 }
 0x1ff   : > { %v588_v7 = vcombine.high %v570_v5, %v1677_v19  ;;  %v595_v8 = vrot.slane %v570_v5, %v1845_v35 }
 0x201   : > { %v602_v10 = vrot.slane %v588_v7, %v1845_v35  ;;  %v603_v11 = vcombine.low %v580_v6, %v595_v8  ;;  %v604_v12 = vcombine.high %v580_v6, %v595_v8 }
 0x203   : > { %v611_v13 = vrot.slane %v603_v11, %v1849_v39  ;;  %v618_v14 = vrot.slane %v604_v12, %v1849_v39  ;;  %v619_v15 = vcombine.low %v587_v9, %v602_v10  ;;  %v620_v16 = vcombine.high %v587_v9, %v602_v10 }
 0x205   : > { %v627_v17 = vrot.slane %v619_v15, %v1849_v39  ;;  %v634_v18 = vrot.slane %v620_v16, %v1849_v39  ;;  %v639_v20 = vcombine.low %v611_v13, %v618_v14  ;;  %v1391_v22 = vcombine.high %v611_v13, %v618_v14 }
 0x207   : > { %v655_v24 = vcombine.low %v627_v17, %v634_v18  ;;  %v1392_v25 = vcombine.high %v627_v17, %v634_v18  ;;  %v646_v26 = vrot.slane %v639_v20, %v1845_v35  ;;  %v654_v28 = vrot.slane %v1391_v22, %v1845_v35 }
 0x209   : > { %v662_v29 = vrot.slane %v655_v24, %v1845_v35  ;;  %v670_v30 = vrot.slane %v1392_v25, %v1845_v35  ;;  %v671_v31 = vcombine.low %v646_v26, %v654_v28 }
 0x20b   : > { %v679_v32 = vcombine.low %v662_v29, %v670_v30  ;;  %v678_v33 = vrot.slane %v671_v31, %v1849_v39 }
 0x20d   : > { %v686_v34 = vrot.slane %v679_v32, %v1849_v39 }
 0x20f   : > { %v687_v36 = vcombine.low %v678_v33, %v686_v34  ;;  %v688_v40 = vcombine.high %v678_v33, %v686_v34 }
 0x211   : > { %v689_v37 = vpack.c.bf16 %v687_v36, %v687_v36  ;;  %v690_v41 = vpack.c.bf16 %v688_v40, %v688_v40 }
 0x213   : > { %v818_v38 = vsel %vm813_vm1, %v689_v37, 0  ;;  %v864_v43 = vsel %vm813_vm1, %v690_v41, 0 }
 0x214   : > { %1428 = vmatpush3.bf16.xpose.msra.mxu1 %v818_v38 }
 0x215   : > { %1433 = vmatprep.subr.bf16.mxu1 %v1677_v19 }
 0x21b   : > { %1430 = vmatmul.mubr.msk.bf16.vlgmr.msra.gmra.mrb[0].mxu1 %vm813_vm1, %v565_v42 }
 0x21c   : > { %1434 = vmatpush3.bf16.xpose.msra.mxu1 %v864_v43  ;;  %1435 = vmatprep.mubr.msk.bf16.mxu1 %vm1682_vm0, %v1677_v19 }
 0x21d   : > { %1439 = vmatprep.subr.bf16.mxu1 %v1677_v19 }
 0x223   : > { %1436 = vmatmul.mubr.msk.bf16.vlgmr.msra.gmra.mrb[4].mxu1 %vm813_vm1, %v566_v44 }
 0x224   : > { %1441 = vmatprep.mubr.msk.bf16.mxu1 %vm1682_vm0, %v1677_v19 }
 0x2ee   : > { %v854_v45 = vpop.f32.mrb[0].mxu1 }
 0x2ef   : > { %v1431_v46 = vpop.f32.mrb[1].mxu1  ;;  %v907_v47 = vsel %vm906_vm2, %v854_v45, -inf }
 0x2f0   : > { %908 = vmax.xlane.f32.xlu1 %v907_v47  ;;  %v857_v48 = vpop.f32.mrb[2].mxu1 }
 0x2f1   : > { %v1432_v49 = vpop.f32.mrb[3].mxu1  ;;  %v1567_v48 = vld [vmem:[%s1811_s20] sm:$0xff]  }
 0x2f2   : > { %1452 = vmatpush3.bf16.msra.mxu0 %v1567_v48  ;;  %v1568_v49 = vld [vmem:[%s1811_s20 + $0x8] sm:$0xff]  }
 0x2f3   : > { %1453 = vmatprep.subr.bf16.mxu0 %v1677_v19 }
 0x2f6   : > { %v900_v50 = vpop.f32.mrb[4].mxu1  ;;  %1454 = vmatpush3.bf16.msra.mxu0 %v1568_v49 }
 0x2f7   : > { %v1437_v52 = vpop.f32.mrb[5].mxu1  ;;  %v910_v53 = vsel %vm906_vm2, %v900_v50, -inf  ;;  %1455 = vmatprep.subr.bf16.mxu0 %v1677_v19 }
 0x2f8   : > { %911 = vmax.xlane.f32.xlu0 %v910_v53  ;;  %v903_v54 = vpop.f32.mrb[6].mxu1 }
 0x2f9   : > { %v1438_v55 = vpop.f32.mrb[7].mxu1 }
 0x301   : > { %692 = vrot.lane.b32.xlu1 %v441_v57, %s1678_s23 }
 0x37d   : > { %v909_v58 = vpop.xlane.xlu1 %908 }
 0x37e   : > { %v913_v59 = vsub.f32 %v854_v45, %v909_v58 }
 0x380   : > { %v915_v61 = vmul.f32 1.442695, %v913_v59 }
 0x381   : > { %v693_v62 = vpop.permute.xlu1 %692 }
 0x382   : > { %1571 = vpow2.f32 %v915_v61  ;;  %v710_v63 = vcombine.high %v693_v62, %v1677_v19  ;;  %v717_v0 = vrot.slane %v693_v62, %v1845_v35 }
 0x384   : > { %v724_v23 = vrot.slane %v710_v63, %v1845_v35  ;;  %v725_v27 = vcombine.low %v702_v21, %v717_v0  ;;  %v726_v2 = vcombine.high %v702_v21, %v717_v0 }
 0x385   : > { %v912_v3 = vpop.xlane.xlu0 %911 }
 0x386   : > { %v733_v4 = vrot.slane %v725_v27, %v1849_v39  ;;  %v740_v5 = vrot.slane %v726_v2, %v1849_v39  ;;  %v741_v6 = vcombine.low %v709_v1, %v724_v23  ;;  %v742_v7 = vcombine.high %v709_v1, %v724_v23  ;;  %v1570_v23 = vld [vmem:[%s1811_s20 + $0x18] sm:$0xff]  }
 0x387   : > { %v914_v8 = vsub.f32 %v900_v50, %v912_v3  ;;  %v1569_v50 = vld [vmem:[%s1811_s20 + $0x10] sm:$0xff]   ;;  %s1683_s20 = smov 32  }
 0x388   : > { %v749_v9 = vrot.slane %v741_v6, %v1849_v39  ;;  %v756_v10 = vrot.slane %v742_v7, %v1849_v39  ;;  %v761_v11 = vcombine.low %v733_v4, %v740_v5  ;;  %v1393_v12 = vcombine.high %v733_v4, %v740_v5  ;;  %1456 = vmatpush3.bf16.msra.mxu0 %v1569_v50 }
 0x389   : > { %v917_v13 = vmul.f32 1.442695, %v914_v8  ;;  %1457 = vmatprep.subr.bf16.mxu0 %v1677_v19 }
 0x38a   : > { %v768_v14 = vrot.slane %v761_v11, %v1845_v35  ;;  %v776_v15 = vrot.slane %v1393_v12, %v1845_v35  ;;  %v777_v16 = vcombine.low %v749_v9, %v756_v10  ;;  %v1394_v17 = vcombine.high %v749_v9, %v756_v10 }
 0x38b   : > { %1573 = vpow2.f32 %v917_v13 }
 0x38c   : > { %v1572_v18 = vpop.eup %1571  ;;  %v784_v20 = vrot.slane %v777_v16, %v1845_v35  ;;  %v792_v22 = vrot.slane %v1394_v17, %v1845_v35  ;;  %v793_v24 = vcombine.low %v768_v14, %v776_v15  ;;  %1458 = vmatpush3.bf16.msra.mxu0 %v1570_v23 }
 0x38d   : > { %v919_v25 = vsel %vm906_vm2, %v1572_v18, 0.0 }
 0x38e   : > { %920 = vadd.xlane.f32.xlu0 %v919_v25  ;;  %v801_v26 = vcombine.low %v784_v20, %v792_v22  ;;  %v800_v28 = vrot.slane %v793_v24, %v1849_v39 }
 0x390   : > { %v808_v29 = vrot.slane %v801_v26, %v1849_v39  ;;  %v1146_v26 = vld [vmem:[#allocation2] sm:$0xff] }
 0x392   : > { %v809_v30 = vcombine.low %v800_v28, %v808_v29  ;;  %v810_v31 = vcombine.high %v800_v28, %v808_v29 }
 0x394   : > { %v811_v32 = vpack.c.bf16 %v809_v30, %v809_v30  ;;  %v812_v33 = vpack.c.bf16 %v810_v31, %v810_v31 }
 0x395   : > { %v1574_v34 = vpop.eup %1573 }
 0x396   : > { %v922_v36 = vsel %vm906_vm2, %v1574_v34, 0.0  ;;  %v936_v37 = vsel %vm934_vm3, %v811_v32, 0  ;;  %v982_v38 = vsel %vm934_vm3, %v812_v33, 0  ;;  %v1407_v32 = vld [vmem:[%s2014_s4] ss:$0 sm:$0xff] (!%p1406_p1) }
 0x397   : > { %923 = vadd.xlane.f32.xlu0 %v922_v36  ;;  %1440 = vmatpush3.bf16.msra.mxu1 %v936_v37 }
 0x398   : > { %1445 = vmatprep.subr.bf16.mxu1 %v1677_v19 }
 0x41b   : > { %v921_v40 = vpop.xlane.xlu0 %920 }
 0x41c   : > { %1575 = vrcp.f32 %v921_v40 }
 0x424   : > { %v924_v41 = vpop.xlane.xlu0 %923 }
 0x425   : > { %1577 = vrcp.f32 %v924_v41 }
 0x426   : > { %v1576_v42 = vpop.eup %1575 }
 0x427   : > { %v927_v43 = vmul.f32 %v1576_v42, %v1572_v18 }
 0x429   : > { %v929_v44 = vpack.c.bf16 %v927_v43, %v927_v43 }
 0x42b   : > { %1442 = vmatmul.mubr.msk.bf16.vlgmr.msra.gmra.mrb[8].mxu1 %vm906_vm2, %v929_v44 }
 0x42c   : > { %1446 = vmatpush3.bf16.msra.mxu1 %v982_v38  ;;  %1447 = vmatprep.mubr.msk.bf16.mxu1 %vm1682_vm0, %v1677_v19 }
 0x42f   : > { %v1578_v45 = vpop.eup %1577 }
 0x430   : > { %v928_v46 = vmul.f32 %v1578_v45, %v1574_v34 }
 0x432   : > { %v930_v47 = vpack.c.bf16 %v928_v46, %v928_v46 }
 0x434   : > { %1448 = vmatmul.mubr.msk.bf16.vlgmr.msra.gmra.mrb[12].mxu1 %vm906_vm2, %v930_v47 }
 0x4fe   : > { %v972_v51 = vpop.f32.mrb[8].mxu1 }
 0x4ff   : > { %v1443_v52 = vpop.f32.mrb[9].mxu1  ;;  %v1024_v55 = vcombine.high %v972_v51, %v1677_v19  ;;  %v1031_v57 = vrot.slane %v972_v51, %v1845_v35 }
 0x500   : > { %v975_v53 = vpop.f32.mrb[10].mxu1 }
 0x501   : > { %v1444_v54 = vpop.f32.mrb[11].mxu1  ;;  %v1038_v62 = vrot.slane %v1024_v55, %v1845_v35 }
 0x507   : > { %v1018_v56 = vpop.f32.mrb[12].mxu1 }
 0x508   : > { %v1039_v58 = vcombine.high %v1018_v56, %v1677_v19  ;;  %v1046_v59 = vrot.slane %v1018_v56, %v1845_v35  ;;  %v1449_v60 = vpop.f32.mrb[13].mxu1 }
 0x509   : > { %v1021_v61 = vpop.f32.mrb[14].mxu1 }
 0x50a   : > { %v1053_v21 = vrot.slane %v1039_v58, %v1845_v35  ;;  %v1054_v63 = vcombine.low %v1031_v57, %v1046_v59  ;;  %v1055_v0 = vcombine.high %v1031_v57, %v1046_v59  ;;  %v1450_v1 = vpop.f32.mrb[15].mxu1 }
 0x50c   : > { %v1062_v27 = vrot.slane %v1054_v63, %v1849_v39  ;;  %v1069_v2 = vrot.slane %v1055_v0, %v1849_v39  ;;  %v1070_v3 = vcombine.low %v1038_v62, %v1053_v21  ;;  %v1071_v4 = vcombine.high %v1038_v62, %v1053_v21 }
 0x50e   : > { %v1078_v19 = vrot.slane %v1070_v3, %v1849_v39  ;;  %v1085_v5 = vrot.slane %v1071_v4, %v1849_v39  ;;  %v1090_v6 = vcombine.low %v1062_v27, %v1069_v2  ;;  %v1399_v7 = vcombine.high %v1062_v27, %v1069_v2 }
 0x510   : > { %v1097_v8 = vrot.slane %v1090_v6, %v1845_v35  ;;  %v1105_v9 = vrot.slane %v1399_v7, %v1845_v35  ;;  %v1106_v10 = vcombine.low %v1078_v19, %v1085_v5  ;;  %v1400_v11 = vcombine.high %v1078_v19, %v1085_v5 }
 0x512   : > { %v1113_v12 = vrot.slane %v1106_v10, %v1845_v35  ;;  %v1121_v13 = vrot.slane %v1400_v11, %v1845_v35  ;;  %v1122_v14 = vcombine.low %v1097_v8, %v1105_v9 }
 0x514   : > { %v1130_v15 = vcombine.low %v1113_v12, %v1121_v13  ;;  %v1129_v16 = vrot.slane %v1122_v14, %v1849_v39 }
 0x516   : > { %v1137_v17 = vrot.slane %v1130_v15, %v1849_v39 }
 0x518   : > { %v1139_v18 = vcombine.high %v1129_v16, %v1137_v17  ;;  %v1138_v20 = vcombine.low %v1129_v16, %v1137_v17 }
 0x51a   : > { %1141 = vrot.lane.b32.xlu0 %v1139_v18, %s1683_s20 }
 0x58c   : > { %v1142_v22 = vpop.permute.xlu0 %1141 }
 0x58d   : > { %v1144_v24 = vsel %vm813_vm1, %v1138_v20, %v1142_v22 }
 0x58e   : > { %v1145_v25 = vpack.c.bf16 %v1144_v24, %v1144_v24 }
 0x590   : > { %1460 = vmatmul.mubr.msk.bf16.vlgmr.msra.gmra.mrb[4].mxu0 %vm1179_vm4, %v1145_v25 }
 0x660   : > { %1228 = sbr.rel (%p1406_p1) target bundleno = 1651 (0x673), region = 48 }
 0x663   : > { %v1217_v28 = vpop.f32.mrb[4].mxu0 }
 0x664   : > { %v1223_v29 = vadd.f32 %v1217_v28, %v1146_v26  ;;  %v1461_v35 = vpop.f32.mrb[5].mxu0 }
 0x665   : > { %v1220_v30 = vpop.f32.mrb[6].mxu0 }
 0x666   : > { %1224 = vst [vmem:[#allocation2] sm:$0xff] %v1223_v29  ;;  %v1462_v31 = vpop.f32.mrb[7].mxu0 }
 0x66d   : > { %v1229_v39 = vld [vmem:[#allocation2] sm:$0xff] }
 0x66e   : > { %v1237_v33 = vadd.f32 %v1407_v32, %v1229_v39 }
 0x670   : > { %v1238_v34 = vpack.c.bf16 %v1237_v33, %v1237_v33 }
 0x672   : > { %1239 = vst [vmem:[%s270_s14] sm:$0xf] %v1238_v34 }
 0x673 PF: > { %s1409_s9 = sshll.u32 %s1661_s22, 6  ;;  %s1254_s15 = sshll.u32 %s270_s14, 4  ;;  %s1255_s15 = int_to_ptr.vmem [resolvable:$true] %s1254_s15 }
 0x674   : > { %s1959_s21 = scalar_lea.hbm %s2015_s5, %s1409_s9  ;;  %s2029_s16 = sand.u32 1, %s1649_s19  }
 0x675   : > { %s1241_s17 = scalar_lea.sflag [#allocation4], %s2029_s16  ;;  %s1579_s26 = scalar_lea.vmem %s1255_s15, 64 }
 0x676   : > { %p1580_p2 = scmp.ne.s32.totalorder %s1255_s15, %s1579_s26  ;;  %s1684_s27 = smov [#allocation3]  }
 0x677   : > { %s1583_s7 = sshll.u32 %s1684_s27, 4  ;;  %s1584_s7 = int_to_ptr.vmem [resolvable:$false] %s1583_s7 }
 0x678   : > { %p1581_p4 = pnand %p1580_p2, %p1764_p3  ;;  %s1585_s8 = scalar_lea.vmem %s1584_s7, 128 }
 0x679   : > { %p1586_p6 = scmp.lt.s32.totalorder %s1255_s15, %s1584_s7  ;;  %p1587_p7 = scmp.lt.s32.totalorder %s1585_s8, %s1579_s26 }
 0x67a   : > { %p1582_p5 = pneg %p1581_p4 }
 0x67b   : > { %p1588_p8 = por %p1587_p7, %p1586_p6 }
 0x67d   : > { %p1589_p10 = pnand %p1588_p8, %p1582_p5 }
 0x67f   : > { %1592 = shalt.err (!%p1589_p10)
}
 0x680   : > { %s1593_s22 = scalar_lea.hbm %s1959_s21, 64  ;;  %s1597_s14 = scalar_lea.hbm %s2015_s5, 128 }
 0x681   : > { %p1594_p11 = scmp.ne.s32.totalorder %s1959_s21, %s1593_s22  ;;  %p1598_p0 = scmp.lt.u32.totalorder %s1959_s21, %s2015_s5 }
 0x682   : > { %p1599_p1 = scmp.lt.u32.totalorder %s1597_s14, %s1593_s22  ;;  %p1601_p4 = scmp.lt.u32.totalorder %s1593_s22, %s1959_s21 }
 0x683   : > { %p1595_p12 = pnand %p1594_p11, %p1764_p3 }
 0x684   : > { %p1600_p2 = por %p1599_p1, %p1598_p0 }
 0x685   : > { %p1596_p13 = pneg %p1595_p12 }
 0x686   : > { %p1602_p5 = por %p1601_p4, %p1600_p2 }
 0x688   : > { %p1603_p6 = pnand %p1602_p5, %p1596_p13 }
 0x68a   : > { %1606 = shalt.err (!%p1603_p6)
}
 0x68b   : > { %1463 = dma.vmem_to_hbm [thread:$0]  (%p1764_p3), %s1255_s15, 64, %s1959_s21, %s1241_s17  }
 0x68c PF: > { %p1469_p7 = scmp.ge.s32.totalorder %s1673_s25, 2  ;;  %s1266_s20 = sand.u32 1, %s1645_s18  }
 0x68d   : > { %s1267_s24 = scalar_lea.sflag [#allocation4], %s1266_s20 }
 0x68e   : > { %p1466_p8 = pnand %p1469_p7, %p1774_p9 }
 0x690   : > { %1640 = dma.done.wait (!%p1466_p8), %s1267_s24, 64  }
 0x691   : > { %1642 = vsyncadd (!%p1466_p8), %s1267_s24, 4294967232  ;;  %s18_s25 = sadd.s32 1, %s1673_s25   ;;  %s2030_s29 = sld [smem:[#allocation6_spill]] }
 0x692   : > { %p15_p10 = scmp.ge.s32.totalorder %s18_s25, 6   ;;  %s2031_s20 = sld [smem:[#allocation11_spill]] }
 0x693   : > { %s2032_s21 = sld [smem:[#allocation7_spill]]  ;;  %s2033_s22 = sld [smem:[#allocation8_spill]] }
 0x694   : > { %s2034_s23 = sld [smem:[#allocation9_spill]]  ;;  %s2035_s24 = sld [smem:[#allocation10_spill]] }
 0x695   : > { %s2036_s18 = smov %s1649_s19  ;;  %17 = sbr.rel (!%p15_p10) target bundleno = 5 (0x5), region = 92 }
 0x697   : > { %s2037_s19 = smov %s2030_s29 }
 0x69c   :  { %1272 = vsyncpa [#allocation4], 1 }
 0x69d   :  { %1274 = vsyncpa [#allocation4 + $0x1], 1 }

</bundles_post_ra>
